<compile_context>
chip_gen: v7x
topology: tpu7x:2x2x1
jax: 0.10.0
libtpu: 0.0.40
codegen_flags: <defaults>
</compile_context>

<pallas_src>
import functools

import jax
import jax.numpy as jnp
from jax.experimental import pallas as pl
from jax.experimental.pallas import tpu as pltpu


# ---------------- Pallas kernel ----------------


def diffusion_fwd_kernel(
    x_ref,        # (TB, D)  f32   clean input tile (flattened NCHW)
    eps_ref,      # (TB, D)  f32   gaussian noise tile
    t_ref,        # (TB, 1)  f32   per-sample timestep
    w1_ref,       # (D, HID) bf16  first-layer weights (VMEM-resident)
    wt_ref,       # (1, HID) f32   time-conditioning row
    bias1_ref,    # (1, HID) f32   pre-folded b1 + bt
    w2_ref,       # (HID, D) bf16  second-layer weights (VMEM-resident)
    b2_ref,       # (1, D)   f32
    eps_hat_ref,  # (TB, D)  f32   out: predicted noise
):
    half_pi = jnp.float32(jnp.pi / 2.0)
    t = t_ref[...]                                   # (TB, 1)
    alpha_t = jnp.cos(t * half_pi)                   # (TB, 1)  EUP
    sigma_t = jnp.sin(t * half_pi)                   # (TB, 1)

    # add_noise: x_t = alpha_t * x + sigma_t * epsilon  (f32 on the VPU)
    x_t = alpha_t * x_ref[...] + sigma_t * eps_ref[...]

    # Layer 1: bf16 operands on the MXU, f32 accumulation.  The rank-1 time
    # conditioning (t @ Wt, K=1) is a broadcast multiply on the VPU instead of
    # a degenerate MXU matmul; b1 + bt arrive pre-folded as bias1.
    h = jnp.dot(
        x_t.astype(jnp.bfloat16), w1_ref[...], preferred_element_type=jnp.float32
    )
    h = h + t * wt_ref[...] + bias1_ref[...]
    h = jnp.maximum(h, 0.0)

    # Layer 2: bf16 operands, f32 accumulation, f32 lane-dense writeback.
    eps_hat_ref[...] = (
        jnp.dot(h.astype(jnp.bfloat16), w2_ref[...], preferred_element_type=jnp.float32)
        + b2_ref[...]
    )


# ---------------- tiling / VMEM helpers ----------------


def _pick_batch_tile(batch: int, cap: int = 512) -> tuple[int, int]:
    """Pick (tb, b_pad): tb a multiple of 16, <= cap, minimizing pad waste and
    preferring >=2 (even) grid steps so both v7x TensorCores get work."""
    b16 = pl.cdiv(batch, 16) * 16
    if b16 <= 16:
        return b16, b16                      # too small to split across cores
    best = None
    max_tb = min(cap, b16)
    for tb in range(16, max_tb + 1, 16):
        steps = pl.cdiv(b16, tb)
        if steps < 2:                        # keep both v7x TCs busy
            continue
        b_pad = steps * tb
        pad = b_pad - batch
        key = (pad, steps % 2, -tb)          # least pad, even steps, largest tile
        if best is None or key < best[0]:
            best = (key, tb, b_pad)
    if best is None:
        return max_tb, pl.cdiv(b16, max_tb) * max_tb
    return best[1], best[2]


def _vmem_limit_bytes() -> int:
    """~3/4 of physical VMEM: ~96 MiB on v5e/v6e (128 MiB), ~48 MiB on v7x (64 MiB)."""
    cap = 64 << 20
    try:
        info = pltpu.get_tpu_info()
        cap = int(getattr(info, "vmem_capacity_bytes", cap))
    except Exception:
        pass
    return max(32 << 20, min((cap * 3) // 4, 100 << 20))


# ---------------- parameter prep (once, outside the hot path) ----------------


def init_params(key, D, HID):
    """Deterministic synthetic f32 parameters for the inner epsilon-predictor."""
    k1, k2, k3 = jax.random.split(key, 3)
    scale1 = 1.0 / jnp.sqrt(jnp.float32(D))
    scale2 = 1.0 / jnp.sqrt(jnp.float32(HID))
    return {
        "w1": jax.random.normal(k1, (D, HID), jnp.float32) * scale1,
        "b1": jnp.zeros((1, HID), jnp.float32),
        "wt": jax.random.normal(k2, (1, HID), jnp.float32),
        "bt": jnp.zeros((1, HID), jnp.float32),
        "w2": jax.random.normal(k3, (HID, D), jnp.float32) * scale2,
        "b2": jnp.zeros((1, D), jnp.float32),
    }


def prepare_inference_params(params):
    """One-time bf16 weight cast + bias fold.  Feed the result to every forward
    call so the HBM-bound kernel never pays a per-call re-cast pass."""
    return {
        "w1": params["w1"].astype(jnp.bfloat16),            # (D, HID)
        "w2": params["w2"].astype(jnp.bfloat16),            # (HID, D)
        "wt": params["wt"].astype(jnp.float32),              # (1, HID)
        "bias1": (params["b1"] + params["bt"]).astype(jnp.float32),  # (1, HID)
        "b2": params["b2"].astype(jnp.float32),              # (1, D)
    }


# ---------------- wrapper ----------------


def diffusion_forward(prepared, x_nchw, t, epsilon_nchw):
    """Fused forward pass. Returns (epsilon_hat, epsilon) in NCHW, like the module."""
    B, C, H, W = x_nchw.shape
    D = C * H * W

    x2d = x_nchw.reshape(B, D).astype(jnp.float32)
    eps2d = epsilon_nchw.reshape(B, D).astype(jnp.float32)
    t2d = t.reshape(B, 1).astype(jnp.float32)

    tb, b_pad = _pick_batch_tile(B)
    if b_pad != B:
        pad = ((0, b_pad - B), (0, 0))
        x2d = jnp.pad(x2d, pad)     # padded rows: x=0, eps=0, t=0 -> x_t=0 (benign)
        eps2d = jnp.pad(eps2d, pad)
        t2d = jnp.pad(t2d, pad)

    w1 = prepared["w1"]            # (D, HID) bf16, pre-cast once
    w2 = prepared["w2"]            # (HID, D) bf16
    wt = prepared["wt"]            # (1, HID) f32
    bias1 = prepared["bias1"]      # (1, HID) f32, pre-folded b1 + bt
    b2 = prepared["b2"]            # (1, D)   f32
    HID = w1.shape[1]

    grid = (b_pad // tb,)
    act_spec = pl.BlockSpec((tb, D), lambda i: (i, 0))       # streamed per tile
    t_spec = pl.BlockSpec((tb, 1), lambda i: (i, 0))
    pinned = lambda shape: pl.BlockSpec(shape, lambda i: (0, 0))  # VMEM-resident

    eps_hat2d = pl.pallas_call(
        diffusion_fwd_kernel,
        out_shape=jax.ShapeDtypeStruct((b_pad, D), jnp.float32),
        grid=grid,
        in_specs=[
            act_spec,                 # x
            act_spec,                 # eps
            t_spec,                   # t
            pinned((D, HID)),         # w1 (bf16)
            pinned((1, HID)),         # wt
            pinned((1, HID)),         # bias1
            pinned((HID, D)),         # w2 (bf16)
            pinned((1, D)),           # b2
        ],
        out_specs=act_spec,           # eps_hat
        compiler_params=pltpu.CompilerParams(
            dimension_semantics=("parallel",),
            vmem_limit_bytes=_vmem_limit_bytes(),
        ),
        # TODO(synk): for large D (real image resolutions) w1/w2 no longer fit
        # VMEM whole (especially v7x's 64 MiB/TC): add a trailing "arbitrary"
        # reduction grid axis over D chunks, accumulate h in a (tb, HID) f32
        # VMEM scratch zero-initialized under pl.when(k == 0), and size the
        # per-chunk bf16 weight tiles ~half as large on v7x as on v5e/v6e.
    )(x2d, eps2d, t2d, w1, wt, bias1, w2, b2)

    eps_hat = eps_hat2d[:B].reshape(B, C, H, W)
    return eps_hat, epsilon_nchw


def reference_forward(params, x_nchw, t, epsilon_nchw):
    """Pure-JAX reference (same bf16-operand / f32-accumulate math as kernel)."""
    B = x_nchw.shape[0]
    D = x_nchw.size // B
    x2d = x_nchw.reshape(B, D).astype(jnp.float32)
    eps2d = epsilon_nchw.reshape(B, D).astype(jnp.float32)
    t2d = t.reshape(B, 1).astype(jnp.float32)
    alpha = jnp.cos(t2d * jnp.pi / 2.0)
    sigma = jnp.sin(t2d * jnp.pi / 2.0)
    x_t = alpha * x2d + sigma * eps2d
    h = (
        jnp.dot(x_t.astype(jnp.bfloat16), params["w1"].astype(jnp.bfloat16),
                preferred_element_type=jnp.float32)
        + t2d * params["wt"] + params["b1"] + params["bt"]
    )
    h = jnp.maximum(h, 0.0)
    eps_hat = (
        jnp.dot(h.astype(jnp.bfloat16), params["w2"].astype(jnp.bfloat16),
                preferred_element_type=jnp.float32)
        + params["b2"]
    )
    return eps_hat.reshape(x_nchw.shape)


if __name__ == "__main__":
    # Small shapes consistent with the module: image input_shape = (C, H, W).
    B, C, H, W = 2, 4, 16, 16
    D = C * H * W          # 1024
    HID = 128              # hidden width of the synthetic inner model

    root = jax.random.PRNGKey(0)
    k_param, k_x, k_t, k_eps = jax.random.split(root, 4)

    params = init_params(k_param, D, HID)
    prepared = prepare_inference_params(params)   # bf16 cast + bias fold: once

    # TODO(synk): t ~ U(0,1) and epsilon ~ N(0,I) (torch.rand / MultivariateNormal)
    # are host-side RNG glue in the module; drawn here with jax.random, not in-kernel.
    x = jax.random.normal(k_x, (B, C, H, W), jnp.float32)
    t = jax.random.uniform(k_t, (B, 1, 1, 1), jnp.float32)          # t ~ U(0,1)
    epsilon = jax.random.normal(k_eps, (B, C, H, W), jnp.float32)   # eps ~ N(0,I)

    fwd = jax.jit(diffusion_forward)
    eps_hat, eps_out = fwd(prepared, x, t, epsilon)
    jax.block_until_ready(eps_hat)

    # Correctness check against a pure-JAX reference using the same precision.
    eps_hat_ref = reference_forward(params, x, t, epsilon)
    assert eps_hat.shape == (B, C, H, W) and eps_out.shape == (B, C, H, W)
    assert jnp.allclose(eps_hat, eps_hat_ref, atol=1e-2, rtol=1e-2)
    assert jnp.allclose(eps_out, epsilon)

    print("KERNEL_OK")
</pallas_src>

<mosaic_0001>
module attributes {stable_mosaic.version = 11 : i64} {
  func.func @diffusion_fwd_kernel(%arg0: i32, %arg1: memref<16x1024xf32, #tpu.memory_space<vmem>>, %arg2: memref<16x1024xf32, #tpu.memory_space<vmem>>, %arg3: memref<16x1xf32, #tpu.memory_space<vmem>>, %arg4: memref<1024x128xbf16, #tpu.memory_space<vmem>>, %arg5: memref<1x128xf32, #tpu.memory_space<vmem>>, %arg6: memref<1x128xf32, #tpu.memory_space<vmem>>, %arg7: memref<128x1024xbf16, #tpu.memory_space<vmem>>, %arg8: memref<1x1024xf32, #tpu.memory_space<vmem>>, %arg9: memref<16x1024xf32, #tpu.memory_space<vmem>>) attributes {dimension_semantics = [#tpu.dimension_semantics<parallel>], iteration_bounds = array<i64: 1>, scalar_prefetch = 0 : i64, scratch_operands = 0 : i64, tpu.core_type = #tpu.core_type<tc>, window_params = [{transform_indices = @transform_0, window_bounds = array<i64: 16, 1024>}, {transform_indices = @transform_1, window_bounds = array<i64: 16, 1024>}, {transform_indices = @transform_2, window_bounds = array<i64: 16, 1>}, {pipeline_mode = #tpu.pipeline_mode<synchronous>, transform_indices = @transform_3, window_bounds = array<i64: 1024, 128>}, {pipeline_mode = #tpu.pipeline_mode<synchronous>, transform_indices = @transform_4, window_bounds = array<i64: 1, 128>}, {pipeline_mode = #tpu.pipeline_mode<synchronous>, transform_indices = @transform_5, window_bounds = array<i64: 1, 128>}, {pipeline_mode = #tpu.pipeline_mode<synchronous>, transform_indices = @transform_6, window_bounds = array<i64: 128, 1024>}, {pipeline_mode = #tpu.pipeline_mode<synchronous>, transform_indices = @transform_7, window_bounds = array<i64: 1, 1024>}, {transform_indices = @transform_8, window_bounds = array<i64: 16, 1024>}]} {
    %c0 = arith.constant 0 : index
    %c0_0 = arith.constant 0 : index
    %0 = vector.load %arg3[%c0, %c0_0] : memref<16x1xf32, #tpu.memory_space<vmem>>, vector<16x1xf32>
    %cst = arith.constant 1.57079637 : f32
    %1 = vector.broadcast %cst : f32 to vector<16x1xf32>
    %2 = arith.mulf %0, %1 : vector<16x1xf32>
    %3 = math.cos %2 : vector<16x1xf32>
    %cst_1 = arith.constant 1.57079637 : f32
    %4 = vector.broadcast %cst_1 : f32 to vector<16x1xf32>
    %5 = arith.mulf %0, %4 : vector<16x1xf32>
    %6 = math.sin %5 : vector<16x1xf32>
    %c0_2 = arith.constant 0 : index
    %c0_3 = arith.constant 0 : index
    %7 = vector.load %arg1[%c0_2, %c0_3] : memref<16x1024xf32, #tpu.memory_space<vmem>>, vector<16x1024xf32>
    %8 = vector.broadcast %3 : vector<16x1xf32> to vector<16x1024xf32>
    %9 = arith.mulf %8, %7 : vector<16x1024xf32>
    %c0_4 = arith.constant 0 : index
    %c0_5 = arith.constant 0 : index
    %10 = vector.load %arg2[%c0_4, %c0_5] : memref<16x1024xf32, #tpu.memory_space<vmem>>, vector<16x1024xf32>
    %11 = vector.broadcast %6 : vector<16x1xf32> to vector<16x1024xf32>
    %12 = arith.mulf %11, %10 : vector<16x1024xf32>
    %13 = arith.addf %9, %12 : vector<16x1024xf32>
    %14 = arith.truncf %13 : vector<16x1024xf32> to vector<16x1024xbf16>
    %c0_6 = arith.constant 0 : index
    %c0_7 = arith.constant 0 : index
    %15 = vector.load %arg4[%c0_6, %c0_7] : memref<1024x128xbf16, #tpu.memory_space<vmem>>, vector<1024x128xbf16>
    %cst_8 = arith.constant dense<0.000000e+00> : vector<16x128xf32>
    %16 = tpu.matmul %14, %15, %cst_8 {dimension_numbers = #tpu.dot_dimension_numbers<[1], [0], [0], [1], [0, 0, 1, 1], [], []>} : vector<16x1024xbf16>, vector<1024x128xbf16>, vector<16x128xf32> -> vector<16x128xf32>
    %c0_9 = arith.constant 0 : index
    %c0_10 = arith.constant 0 : index
    %17 = vector.load %arg5[%c0_9, %c0_10] : memref<1x128xf32, #tpu.memory_space<vmem>>, vector<1x128xf32>
    %18 = vector.broadcast %0 : vector<16x1xf32> to vector<16x128xf32>
    %19 = vector.broadcast %17 : vector<1x128xf32> to vector<16x128xf32>
    %20 = arith.mulf %18, %19 : vector<16x128xf32>
    %21 = arith.addf %16, %20 : vector<16x128xf32>
    %c0_11 = arith.constant 0 : index
    %c0_12 = arith.constant 0 : index
    %22 = vector.load %arg6[%c0_11, %c0_12] : memref<1x128xf32, #tpu.memory_space<vmem>>, vector<1x128xf32>
    %23 = vector.broadcast %22 : vector<1x128xf32> to vector<16x128xf32>
    %24 = arith.addf %21, %23 : vector<16x128xf32>
    %cst_13 = arith.constant 0.000000e+00 : f32
    %25 = vector.broadcast %cst_13 : f32 to vector<16x128xf32>
    %26 = arith.maximumf %24, %25 : vector<16x128xf32>
    %27 = arith.truncf %26 : vector<16x128xf32> to vector<16x128xbf16>
    %c0_14 = arith.constant 0 : index
    %c0_15 = arith.constant 0 : index
    %28 = vector.load %arg7[%c0_14, %c0_15] : memref<128x1024xbf16, #tpu.memory_space<vmem>>, vector<128x1024xbf16>
    %cst_16 = arith.constant dense<0.000000e+00> : vector<16x1024xf32>
    %29 = tpu.matmul %27, %28, %cst_16 {dimension_numbers = #tpu.dot_dimension_numbers<[1], [0], [0], [1], [0, 0, 1, 1], [], []>} : vector<16x128xbf16>, vector<128x1024xbf16>, vector<16x1024xf32> -> vector<16x1024xf32>
    %c0_17 = arith.constant 0 : index
    %c0_18 = arith.constant 0 : index
    %30 = vector.load %arg8[%c0_17, %c0_18] : memref<1x1024xf32, #tpu.memory_space<vmem>>, vector<1x1024xf32>
    %31 = vector.broadcast %30 : vector<1x1024xf32> to vector<16x1024xf32>
    %32 = arith.addf %29, %31 : vector<16x1024xf32>
    %c0_19 = arith.constant 0 : index
    %c0_20 = arith.constant 0 : index
    %33 = vector.load %arg9[%c0_19, %c0_20] : memref<16x1024xf32, #tpu.memory_space<vmem>>, vector<16x1024xf32>
    tpu.vector_store %arg9[%c0_19, %c0_20], %32 {strides = array<i32>} : memref<16x1024xf32, #tpu.memory_space<vmem>>, vector<16x1024xf32>,
    return
  }
  func.func @transform_0(%arg0: i32) -> (i32, i32) {
    %c0_i32 = arith.constant 0 : i32
    %c0_i32_0 = arith.constant 0 : i32
    return %arg0, %c0_i32 : i32, i32
  }
  func.func @transform_1(%arg0: i32) -> (i32, i32) {
    %c0_i32 = arith.constant 0 : i32
    %c0_i32_0 = arith.constant 0 : i32
    return %arg0, %c0_i32 : i32, i32
  }
  func.func @transform_2(%arg0: i32) -> (i32, i32) {
    %c0_i32 = arith.constant 0 : i32
    %c0_i32_0 = arith.constant 0 : i32
    return %arg0, %c0_i32 : i32, i32
  }
  func.func @transform_3(%arg0: i32) -> (i32, i32) {
    %c0_i32 = arith.constant 0 : i32
    %c0_i32_0 = arith.constant 0 : i32
    %c0_i32_1 = arith.constant 0 : i32
    return %c0_i32, %c0_i32_0 : i32, i32
  }
  func.func @transform_4(%arg0: i32) -> (i32, i32) {
    %c0_i32 = arith.constant 0 : i32
    %c0_i32_0 = arith.constant 0 : i32
    %c0_i32_1 = arith.constant 0 : i32
    return %c0_i32, %c0_i32_0 : i32, i32
  }
  func.func @transform_5(%arg0: i32) -> (i32, i32) {
    %c0_i32 = arith.constant 0 : i32
    %c0_i32_0 = arith.constant 0 : i32
    %c0_i32_1 = arith.constant 0 : i32
    return %c0_i32, %c0_i32_0 : i32, i32
  }
  func.func @transform_6(%arg0: i32) -> (i32, i32) {
    %c0_i32 = arith.constant 0 : i32
    %c0_i32_0 = arith.constant 0 : i32
    %c0_i32_1 = arith.constant 0 : i32
    return %c0_i32, %c0_i32_0 : i32, i32
  }
  func.func @transform_7(%arg0: i32) -> (i32, i32) {
    %c0_i32 = arith.constant 0 : i32
    %c0_i32_0 = arith.constant 0 : i32
    %c0_i32_1 = arith.constant 0 : i32
    return %c0_i32, %c0_i32_0 : i32, i32
  }
  func.func @transform_8(%arg0: i32) -> (i32, i32) {
    %c0_i32 = arith.constant 0 : i32
    %c0_i32_0 = arith.constant 0 : i32
    return %arg0, %c0_i32 : i32, i32
  }
}

</mosaic_0001>

<bundles_post_ra>
// kernel: diffusion_forward.1
= control target key start
LH: loop header
LB: loop body
LE: loop exit
PB: predicated region body
PF: predicated region fallthrough
CT: control target
= control target key end

     0   :  { %13 = vsyncpa [#allocation3], 0  ;;  %s2246_s27 = smov [#allocation2]   ;;  %s2880_s0 = inlined_call_operand.vmem [shape: f32[16,1024], index: 0, kind: input, shape index: {}]   ;;  %s2881_s1 = inlined_call_operand.vmem [shape: f32[16,1024], index: 1, kind: input, shape index: {}]   ;;  %s2882_s2 = inlined_call_operand.vmem [shape: f32[16,1], index: 2, kind: input, shape index: {}]   ;;  %s2883_s3 = inlined_call_operand.vmem [shape: bf16[1024,128], index: 3, kind: input, shape index: {}]   ;;  %s2884_s4 = inlined_call_operand.vmem [shape: f32[1,128], index: 4, kind: input, shape index: {}]   ;;  %s2885_s5 = inlined_call_operand.vmem [shape: f32[1,128], index: 5, kind: input, shape index: {}]   ;;  %s2886_s6 = inlined_call_operand.hbm [shape: bf16[128,1024], index: 6, kind: input, shape index: {}]   ;;  %s2887_s7 = inlined_call_operand.vmem [shape: f32[1,1024], index: 7, kind: input, shape index: {}]   ;;  %s2888_s8 = inlined_call_operand.vmem [shape: f32[16,1024], index: 8, kind: output, shape index: {}]  }
   0x1   :  { %s31_s28 = sshll.u32 %s2246_s27, 4  ;;  %s2222_s9 = scalar_lea.hbm %s2886_s6, 8192  ;;  %s32_s28 = int_to_ptr.vmem [resolvable:$true] %s31_s28 }
   0x2   :  { %p2223_p0 = scmp.ne.s32.totalorder %s2886_s6, %s2222_s9  ;;  %p2226_p1 = scmp.lt.u32.totalorder %s2222_s9, %s2886_s6 }
   0x4   :  { %p2228_p2 = pnand %p2226_p1, %p2223_p0 }
   0x6   :  { %2231 = shalt.err (!%p2228_p2)
}
   0x7   :  { %s2232_s14 = scalar_lea.vmem %s32_s28, 8192  ;;  %p2237_p4 = scmp.lt.s32.totalorder %s32_s28, %s32_s28 }
   0x8   :  { %p2233_p3 = scmp.ne.s32.totalorder %s32_s28, %s2232_s14  ;;  %p2238_p5 = scmp.lt.s32.totalorder %s2232_s14, %s2232_s14 }
   0xa   :  { %p2239_p6 = por %p2238_p5, %p2237_p4 }
   0xc   :  { %p2240_p7 = pnand %p2239_p6, %p2233_p3 }
   0xe   :  { %2243 = shalt.err (!%p2240_p7)
}
   0xf   :  { %s2247_s15 = smov 512   ;;  %s2248_s16 = smov 32  }
  0x10   :  { %37 = dma.hbm_to_vmem [thread:$0]  %s2886_s6, 8192, %s32_s28, [#allocation3], %s2247_s15, %s2247_s15, %s2248_s16  }
  0x11   :  { %2244 = dma.done.wait [#allocation3], 8192  }
  0x12   :  { %2245 = vsyncadd [#allocation3], 4294959104  ;;  %v2249_v0 = vmov 0   ;;  %v2318_v1 = vld [vmem:[%s2882_s2] sm:$0xff]  ;;  %v2323_v2 = vld [vmem:[%s2882_s2 + $0x8] sm:$0xff] }
  0x13   :  { %2149 = vset.pattern.permute.xlu1 %v2249_v0  ;;  %2148 = vset.pattern.permute.xlu0 %v2249_v0  ;;  %v2326_v3 = vmul.f32 1.5707964, %v2318_v1  ;;  %v2329_v4 = vmul.f32 1.5707964, %v2323_v2  ;;  %v2150_v5 = vld [vmem:[%s2883_s3 + $0x40] sm:$0xff]   ;;  %v2154_v17 = vld [vmem:[%s2883_s3 + $0x48] sm:$0xff]  }
  0x14   :  { %v2151_v8 = vld [vmem:[%s2883_s3 + $0xc0] sm:$0xff]   ;;  %2042 = vmatprep.subr.bf16.mxu0 %v2150_v5  ;;  %v2155_v26 = vld [vmem:[%s2883_s3 + $0xc8] sm:$0xff]   ;;  %v2158_v33 = vld [vmem:[%s2883_s3 + $0x50] sm:$0xff]   ;;  %v2250_v37 = vmov 683565275  }
  0x15   :  { %v48_v6 = vand.u32 2147483647, %v2326_v3  ;;  %v51_v7 = vand.u32 2139095040, %v2326_v3  ;;  %v2152_v9 = vld [vmem:[%s2883_s3] sm:$0xff]   ;;  %v151_v10 = vand.u32 2147483647, %v2329_v4  ;;  %2064 = vmatprep.subr.bf16.mxu1 %v2151_v8 }
  0x16   :  { %v154_v11 = vand.u32 2139095040, %v2329_v4  ;;  %2043 = vmatpush3.bf16.msra.mxu0 %v2152_v9  ;;  %v2153_v14 = vld [vmem:[%s2883_s3 + $0x80] sm:$0xff]   ;;  %v2156_v27 = vld [vmem:[%s2883_s3 + $0x8] sm:$0xff]   ;;  %v2251_v39 = vmov 2475754826   ;;  %v2159_v43 = vld [vmem:[%s2883_s3 + $0xd0] sm:$0xff]  }
  0x17   :  { %v52_v12 = vshrl.u32 %v51_v7, 23  ;;  %v55_v13 = vand.u32 8388607, %v48_v6  ;;  %v158_v16 = vand.u32 8388607, %v151_v10  ;;  %2065 = vmatpush3.bf16.msra.mxu1 %v2153_v14  ;;  %2044 = vmatprep.subr.bf16.mxu0 %v2154_v17  ;;  %v2157_v28 = vld [vmem:[%s2883_s3 + $0x88] sm:$0xff]  }
  0x18   :  { %v155_v15 = vshrl.u32 %v154_v11, 23  ;;  %2066 = vmatprep.subr.bf16.mxu1 %v2155_v26  ;;  %v2252_v41 = vmov 2131351028   ;;  %v2253_v44 = vmov 2102212464   ;;  %v2160_v48 = vld [vmem:[%s2883_s3 + $0x10] sm:$0xff]  }
  0x19   :  { %v1896_v18 = vadd.s32 4294967169, %v52_v12  ;;  %v56_v19 = vor.u32 8388608, %v55_v13  ;;  %v159_v21 = vor.u32 8388608, %v158_v16  ;;  %v2254_v46 = vmov 920167782   ;;  %v2161_v49 = vld [vmem:[%s2883_s3 + $0x90] sm:$0xff]  }
  0x1a   :  { %v1900_v20 = vadd.s32 4294967169, %v155_v15  ;;  %2045 = vmatpush3.bf16.msra.mxu0 %v2156_v27  ;;  %v2255_v55 = vmov 1326507024   ;;  %v2162_v57 = vld [vmem:[%s2883_s3 + $0x58] sm:$0xff]   ;;  %v2166_v16 = vld [vmem:[%s2883_s3 + $0x60] sm:$0xff]   ;;  %vm50_vm15 = vcmp.lt.s32.totalorder %v2326_v3, 0 }
  0x1b   :  { %v58_v22 = vadd.s32 1, %v1896_v18  ;;  %v2354_v23 = vshll.u32 %v56_v19, 8  ;;  %v2356_v25 = vshll.u32 %v159_v21, 8  ;;  %2067 = vmatpush3.bf16.msra.mxu1 %v2157_v28  ;;  %2046 = vmatprep.subr.bf16.mxu0 %v2158_v33  ;;  %v2163_v58 = vld [vmem:[%s2883_s3 + $0xd8] sm:$0xff]   ;;  %vm2519_vm13 = vcmp.le.f32.partialorder %v48_v6, 0.7853982 }
  0x1c   :  { %v161_v24 = vadd.s32 1, %v1900_v20  ;;  %2068 = vmatprep.subr.bf16.mxu1 %v2159_v43  ;;  %v2164_v63 = vld [vmem:[%s2883_s3 + $0x18] sm:$0xff]  }
  0x1d   :  { %vm59_vm0 = vcmp.gt.s32.totalorder %v58_v22, 0  ;;  %v2165_v15 = vld [vmem:[%s2883_s3 + $0x98] sm:$0xff]  }
  0x1e   :  { %v60_v29 = vsel %vm59_vm0, %v58_v22, 0  ;;  %vm162_vm1 = vcmp.gt.s32.totalorder %v161_v24, 0  ;;  %2047 = vmatpush3.bf16.msra.mxu0 %v2160_v48  ;;  %vm153_vm0 = vcmp.lt.s32.totalorder %v2329_v4, 0 }
  0x1f   :  { %v2367_v30 = vshrl.u32 %v60_v29, 5  ;;  %v62_v31 = vand.u32 31, %v60_v29  ;;  %v163_v32 = vsel %vm162_vm1, %v161_v24, 0  ;;  %2069 = vmatpush3.bf16.msra.mxu1 %v2161_v49  ;;  %2048 = vmatprep.subr.bf16.mxu0 %v2162_v57  ;;  %vm152_vm1 = vcmp.le.f32.partialorder %v151_v10, 0.7853982 }
  0x20   :  { %v2372_v34 = vshrl.u32 %v163_v32, 5  ;;  %v2374_v35 = vand.u32 31, %v163_v32  ;;  %2070 = vmatprep.subr.bf16.mxu1 %v2163_v58  ;;  %v2167_v32 = vld [vmem:[%s2883_s3 + $0xe0] sm:$0xff]  }
  0x21   :  { %v63_v36 = vsub.s32 32, %v62_v31  ;;  %v65_v38 = vshll.u32 %v2250_v37, %v62_v31  ;;  %v68_v40 = vshll.u32 %v2251_v39, %v62_v31  ;;  %v71_v42 = vshll.u32 %v2252_v41, %v62_v31 }
  0x22   :  { %v74_v45 = vshll.u32 %v2253_v44, %v62_v31  ;;  %v77_v47 = vshll.u32 %v2254_v46, %v62_v31  ;;  %vm80_vm2 = vcmp.lt.s32.totalorder %v2367_v30, 1  ;;  %vm81_vm3 = vcmp.lt.s32.totalorder %v2367_v30, 2  ;;  %2049 = vmatpush3.bf16.msra.mxu0 %v2164_v63 }
  0x23   :  { %v64_v50 = vshrl.u32 %v2250_v37, %v63_v36  ;;  %v66_v51 = vshrl.u32 %v2251_v39, %v63_v36  ;;  %v69_v52 = vshrl.u32 %v2252_v41, %v63_v36  ;;  %v72_v53 = vshrl.u32 %v2253_v44, %v63_v36  ;;  %2071 = vmatpush3.bf16.msra.mxu1 %v2165_v15 }
  0x24   :  { %v75_v54 = vshrl.u32 %v2254_v46, %v63_v36  ;;  %v78_v56 = vshrl.u32 %v2255_v55, %v63_v36  ;;  %vm82_vm4 = vcmp.lt.s32.totalorder %v2367_v30, 3  ;;  %vm83_vm5 = vcmp.lt.s32.totalorder %v2367_v30, 4  ;;  %2050 = vmatprep.subr.bf16.mxu0 %v2166_v16  ;;  %v2168_v30 = vld [vmem:[%s2883_s3 + $0x20] sm:$0xff]   ;;  %2072 = vmatprep.subr.bf16.mxu1 %v2167_v32 }
  0x25   :  { %v67_v59 = vor.u32 %v66_v51, %v65_v38  ;;  %v70_v60 = vor.u32 %v69_v52, %v68_v40  ;;  %v73_v61 = vor.u32 %v72_v53, %v71_v42  ;;  %v166_v62 = vsub.s32 32, %v2374_v35  ;;  %v2172_v51 = vld [vmem:[%s2883_s3 + $0x28] sm:$0xff]  }
  0x26   :  { %v76_v5 = vor.u32 %v75_v54, %v74_v45  ;;  %v79_v7 = vor.u32 %v78_v56, %v77_v47  ;;  %v168_v8 = vshll.u32 %v2250_v37, %v2374_v35  ;;  %v171_v9 = vshll.u32 %v2251_v39, %v2374_v35  ;;  %v2169_v45 = vld [vmem:[%s2883_s3 + $0xa0] sm:$0xff]   ;;  %2051 = vmatpush3.bf16.msra.mxu0 %v2168_v30 }
  0x27   :  { %v84_v11 = vsel %vm80_vm2, %v64_v50, %v67_v59  ;;  %v85_v12 = vsel %vm83_vm5, %v73_v61, 2102212464  ;;  %v88_v13 = vsel %vm80_vm2, %v67_v59, %v70_v60  ;;  %v92_v14 = vsel %vm80_vm2, %v70_v60, %v73_v61  ;;  %2073 = vmatpush3.bf16.msra.mxu1 %v2169_v45 }
  0x28   :  { %v86_v17 = vsel %vm82_vm4, %v70_v60, %v85_v12  ;;  %v89_v18 = vsel %vm83_vm5, %v76_v5, 920167782  ;;  %v93_v19 = vsel %vm83_vm5, %v79_v7, 1326507024  ;;  %v167_v20 = vshrl.u32 %v2250_v37, %v166_v62 }
  0x29   :  { %v87_v21 = vsel %vm81_vm3, %v84_v11, %v86_v17  ;;  %v90_v22 = vsel %vm82_vm4, %v73_v61, %v89_v18  ;;  %v94_v24 = vsel %vm82_vm4, %v76_v5, %v93_v19  ;;  %v169_v26 = vshrl.u32 %v2251_v39, %v166_v62 }
  0x2a   :  { %v91_v27 = vsel %vm81_vm3, %v88_v13, %v90_v22  ;;  %v95_v28 = vsel %vm81_vm3, %v92_v14, %v94_v24  ;;  %v103_v29 = vmul.u32 %v2354_v23, %v87_v21  ;;  %v172_v31 = vshrl.u32 %v2252_v41, %v166_v62 }
  0x2b   :  { %v2443_v33 = vmul.u32.u64.low %v2354_v23, %v95_v28  ;;  %v2444_v36 = vmul.u32.u64.high %v2354_v23, %v95_v28, %v2443_v33  ;;  %v2447_v37 = vmul.u32.u64.low %v2354_v23, %v91_v27  ;;  %v2448_v38 = vmul.u32.u64.high %v2354_v23, %v91_v27, %v2447_v37 }
  0x2c   :  { %v170_v39 = vor.u32 %v169_v26, %v168_v8  ;;  %v173_v40 = vor.u32 %v172_v31, %v171_v9  ;;  %v174_v42 = vshll.u32 %v2252_v41, %v2374_v35  ;;  %v175_v43 = vshrl.u32 %v2253_v44, %v166_v62  ;;  %v2170_v41 = vld [vmem:[%s2883_s3 + $0x68] sm:$0xff]  }
  0x2d   :  { %v177_v23 = vshll.u32 %v2253_v44, %v2374_v35  ;;  %v178_v47 = vshrl.u32 %v2254_v46, %v166_v62  ;;  %v180_v48 = vshll.u32 %v2254_v46, %v2374_v35  ;;  %v181_v49 = vshrl.u32 %v2255_v55, %v166_v62  ;;  %v2171_v44 = vld [vmem:[%s2883_s3 + $0xe8] sm:$0xff]   ;;  %2052 = vmatprep.subr.bf16.mxu0 %v2170_v41 }
  0x2e   :  { %v176_v50 = vor.u32 %v175_v43, %v174_v42  ;;  %vm183_vm6 = vcmp.lt.s32.totalorder %v2372_v34, 1  ;;  %vm184_vm7 = vcmp.lt.s32.totalorder %v2372_v34, 2  ;;  %vm185_vm8 = vcmp.lt.s32.totalorder %v2372_v34, 3  ;;  %2074 = vmatprep.subr.bf16.mxu1 %v2171_v44  ;;  %v2173_v55 = vld [vmem:[%s2883_s3 + $0xa8] sm:$0xff]   ;;  %2053 = vmatpush3.bf16.msra.mxu0 %v2172_v51 }
  0x2f   :  { %vm105_vm9 = vc.u32 %v2444_v36, %v2447_v37  ;;  %v106_v35 = vadd.s32 1, %v2448_v38  ;;  %v179_v46 = vor.u32 %v178_v47, %v177_v23  ;;  %v182_v52 = vor.u32 %v181_v49, %v180_v48  ;;  %2075 = vmatpush3.bf16.msra.mxu1 %v2173_v55 }
  0x30   :  { %vm186_vm10 = vcmp.lt.s32.totalorder %v2372_v34, 4  ;;  %v187_v53 = vsel %vm183_vm6, %v167_v20, %v170_v39  ;;  %v191_v54 = vsel %vm183_vm6, %v170_v39, %v173_v40  ;;  %v195_v59 = vsel %vm183_vm6, %v173_v40, %v176_v50 }
  0x31   :  { %v107_v56 = vsel %vm105_vm9, %v106_v35, %v2448_v38  ;;  %v188_v57 = vsel %vm186_vm10, %v176_v50, 2102212464  ;;  %v192_v58 = vsel %vm186_vm10, %v179_v46, 920167782  ;;  %v196_v63 = vsel %vm186_vm10, %v182_v52, 1326507024 }
  0x32   :  { %v108_v60 = vadd.s32 %v107_v56, %v103_v29  ;;  %v189_v61 = vsel %vm185_vm8, %v173_v40, %v188_v57  ;;  %v193_v62 = vsel %vm185_vm8, %v176_v50, %v192_v58  ;;  %v197_v8 = vsel %vm185_vm8, %v179_v46, %v196_v63 }
  0x33   :  { %v190_v5 = vsel %vm184_vm7, %v187_v53, %v189_v61  ;;  %v194_v7 = vsel %vm184_vm7, %v191_v54, %v193_v62  ;;  %v198_v11 = vsel %vm184_vm7, %v195_v59, %v197_v8  ;;  %vm140_vm8 = vweird.f32 %v2326_v3 }
  0x34   :  { %v109_v9 = vadd.s32 536870912, %v108_v60  ;;  %v2504_v12 = vmul.u32.u64.low %v2356_v25, %v194_v7  ;;  %v2505_v13 = vmul.u32.u64.high %v2356_v25, %v194_v7, %v2504_v12  ;;  %v206_v17 = vmul.u32 %v2356_v25, %v190_v5 }
  0x35   :  { %v2508_v14 = vmul.u32.u64.low %v2356_v25, %v198_v11  ;;  %v2509_v15 = vmul.u32.u64.high %v2356_v25, %v198_v11, %v2508_v14  ;;  %v104_v25 = vadd.s32 %v2447_v37, %v2444_v36 }
  0x36   :  { %v110_v16 = vshrl.u32 %v109_v9, 30  ;;  %v209_v19 = vadd.s32 1, %v2505_v13 }
  0x37   :  { %vm208_vm11 = vc.u32 %v2509_v15, %v2504_v12  ;;  %v207_v44 = vadd.s32 %v2504_v12, %v2509_v15 }
  0x38   :  { %v111_v18 = vshll.u32 %v110_v16, 30  ;;  %v210_v34 = vsel %vm208_vm11, %v209_v19, %v2505_v13  ;;  %v134_v41 = vsub.s32 4, %v110_v16 }
  0x39   :  { %v211_v21 = vadd.s32 %v210_v34, %v206_v17 }
  0x3a   :  { %v112_v20 = vsub.s32 %v108_v60, %v111_v18  ;;  %v135_v51 = vsel %vm50_vm15, %v134_v41, %v110_v16 }
  0x3b   :  { %v212_v24 = vadd.s32 536870912, %v211_v21  ;;  %v137_v58 = vsel %vm2519_vm13, 0, %v135_v51  ;;  %v2182_v51 = vld [vmem:[%s2883_s3 + $0x140] sm:$0xff]  }
  0x3c   :  { %v114_v22 = vsub.s32 0, %v112_v20  ;;  %v347_v9 = vadd.s32 3, %v137_v58  ;;  %v141_v15 = vand.u32 3, %v137_v58  ;;  %v464_v58 = vld [vmem:[%s2880_s0 + $0x10] sm:$0xff] }
  0x3d   :  { %v213_v27 = vshrl.u32 %v212_v24, 30 }
  0x3e   :  { %v1897_v26 = vmin.u32 %v114_v22, %v112_v20  ;;  %v348_v14 = vand.u32 3, %v347_v9  ;;  %vm146_vm3 = vcmp.eq.s32.totalorder %v141_v15, 2  ;;  %vm143_vm5 = vcmp.eq.s32.totalorder %v141_v15, 0 }
  0x3f   :  { %v214_v29 = vshll.u32 %v213_v27, 30  ;;  %v237_v61 = vsub.s32 4, %v213_v27  ;;  %vm142_vm7 = vcmp.lt.s32.totalorder %v141_v15, 2  ;;  %v513_v15 = vld [vmem:[%s2881_s1 + $0x48] sm:$0xff] }
  0x40   :  { %v116_v28 = vclz %v1897_v26  ;;  %vm353_vm2 = vcmp.eq.s32.totalorder %v348_v14, 2  ;;  %vm350_vm4 = vcmp.eq.s32.totalorder %v348_v14, 0  ;;  %vm349_vm6 = vcmp.lt.s32.totalorder %v348_v14, 2  ;;  %v471_v14 = vld [vmem:[%s2880_s0 + $0x48] sm:$0xff] }
  0x41   :  { %v215_v32 = vsub.s32 %v211_v21, %v214_v29  ;;  %v238_v13 = vsel %vm153_vm0, %v237_v61, %v213_v27 }
  0x42   :  { %v1898_v31 = vadd.s32 4294967294, %v116_v28  ;;  %v240_v18 = vsel %vm152_vm1, 0, %v238_v13  ;;  %v469_v13 = vld [vmem:[%s2880_s0 + $0x38] sm:$0xff] }
  0x43   :  { %v217_v38 = vsub.s32 0, %v215_v32  ;;  %v451_v21 = vadd.s32 3, %v240_v18 }
  0x44   :  { %vm1899_vm12 = vcmp.lt.s32.totalorder %v1898_v31, 0 }
  0x45   :  { %v119_v33 = vsel %vm1899_vm12, 0, %v1898_v31  ;;  %v1901_v42 = vmin.u32 %v217_v38, %v215_v32  ;;  %v452_v31 = vand.u32 3, %v451_v21  ;;  %v2174_v38 = vld [vmem:[%s2883_s3 + $0x70] sm:$0xff]   ;;  %v512_v21 = vld [vmem:[%s2881_s1 + $0x40] sm:$0xff] }
  0x46   :  { %v120_v30 = vsub.s32 32, %v119_v33  ;;  %v121_v39 = vshll.u32 %v112_v20, %v119_v33  ;;  %v124_v40 = vsub.s32 4294967266, %v119_v33  ;;  %2054 = vmatprep.subr.bf16.mxu0 %v2174_v38 }
  0x47   :  { %v219_v47 = vclz %v1901_v42  ;;  %vm457_vm9 = vcmp.eq.s32.totalorder %v452_v31, 2  ;;  %vm454_vm11 = vcmp.eq.s32.totalorder %v452_v31, 0 }
  0x48   :  { %v122_v43 = vshrl.u32 %v104_v25, %v120_v30  ;;  %v125_v45 = vadd.s32 127, %v124_v40  ;;  %v2175_v30 = vld [vmem:[%s2883_s3 + $0xf0] sm:$0xff]  }
  0x49   :  { %v1902_v36 = vadd.s32 4294967294, %v219_v47  ;;  %2076 = vmatprep.subr.bf16.mxu1 %v2175_v30 }
  0x4a   :  { %v123_v48 = vor.u32 %v122_v43, %v121_v39  ;;  %v126_v49 = vshll.u32 %v125_v45, 23  ;;  %v2177_v39 = vld [vmem:[%s2883_s3 + $0xb0] sm:$0xff]  }
  0x4b   :  { %vm1903_vm14 = vcmp.lt.s32.totalorder %v1902_v36, 0  ;;  %2077 = vmatpush3.bf16.msra.mxu1 %v2177_v39 }
  0x4c   :  { %v127_v37 = vor.u32 4788187, %v126_v49  ;;  %v130_v50 = vcvt.s32.f32 %v123_v48  ;;  %v222_v46 = vsel %vm1903_vm14, 0, %v1902_v36 }
  0x4d   :  { %v223_v52 = vsub.s32 32, %v222_v46  ;;  %v224_v6 = vshll.u32 %v215_v32, %v222_v46  ;;  %v227_v53 = vsub.s32 4294967266, %v222_v46  ;;  %v244_v32 = vand.u32 3, %v240_v18  ;;  %v2181_v46 = vld [vmem:[%s2883_s3 + $0xb8] sm:$0xff]  }
  0x4e   :  { %v128_v35 = vand.u32 2147483647, %v127_v37  ;;  %v515_v18 = vld [vmem:[%s2881_s1 + $0x58] sm:$0xff] }
  0x4f   :  { %v225_v55 = vshrl.u32 %v207_v44, %v223_v52  ;;  %v228_v56 = vadd.s32 127, %v227_v53  ;;  %vm249_vm10 = vcmp.eq.s32.totalorder %v244_v32, 2  ;;  %vm246_vm12 = vcmp.eq.s32.totalorder %v244_v32, 0  ;;  %v2178_v44 = vld [vmem:[%s2883_s3 + $0x78] sm:$0xff]   ;;  %v2183_v52 = vld [vmem:[%s2883_s3 + $0x1c0] sm:$0xff]  }
  0x50   :  { %v131_v54 = vmul.f32 %v130_v50, %v128_v35  ;;  %vm245_vm14 = vcmp.lt.s32.totalorder %v244_v32, 2  ;;  %v2179_v35 = vld [vmem:[%s2883_s3 + $0xf8] sm:$0xff]   ;;  %v475_v32 = vld [vmem:[%s2880_s0 + $0x68] sm:$0xff] }
  0x51   :  { %v226_v59 = vor.u32 %v225_v55, %v224_v6  ;;  %v229_v60 = vshll.u32 %v228_v56, 23  ;;  %2078 = vmatprep.subr.bf16.mxu1 %v2179_v35  ;;  %v463_v6 = vld [vmem:[%s2880_s0 + $0x8] sm:$0xff]  ;;  %v507_v55 = vld [vmem:[%s2881_s1 + $0x18] sm:$0xff]  ;;  %v462_v56 = vld [vmem:[%s2880_s0] sm:$0xff] }
  0x52   :  { %v132_v57 = vxor.u32 2147483648, %v131_v54  ;;  %2079 = vmatpush3.bf16.msra.mxu1 %v2181_v46 }
  0x53   :  { %v230_v5 = vor.u32 4788187, %v229_v60  ;;  %v233_v7 = vcvt.s32.f32 %v226_v59  ;;  %2108 = vmatprep.subr.bf16.mxu1 %v2183_v52  ;;  %v506_v59 = vld [vmem:[%s2881_s1 + $0x10] sm:$0xff]  ;;  %v2184_v52 = vld [vmem:[%s2883_s3 + $0x100] sm:$0xff]  }
  0x54   :  { %v133_v62 = vsel %vm50_vm15, %v132_v57, %v131_v54  ;;  %vm243_vm15 = vweird.f32 %v2329_v4  ;;  %v465_v54 = vld [vmem:[%s2880_s0 + $0x18] sm:$0xff]  ;;  %v504_v57 = vld [vmem:[%s2881_s1] sm:$0xff] }
  0x55   :  { %v136_v63 = vsel %vm2519_vm13, %v2326_v3, %v133_v62  ;;  %v231_v8 = vand.u32 2147483647, %v230_v5  ;;  %v2176_v3 = vld [vmem:[%s2883_s3 + $0x30] sm:$0xff]   ;;  %vm453_vm13 = vcmp.lt.s32.totalorder %v452_v31, 2 }
  0x56   :  { %2214 = vcosq.f32 %v136_v63  ;;  %2055 = vmatpush3.bf16.msra.mxu0 %v2176_v3 }
  0x57   :  { %2216 = vsinq.f32 %v136_v63  ;;  %v234_v11 = vmul.f32 %v233_v7, %v231_v8  ;;  %2056 = vmatprep.subr.bf16.mxu0 %v2178_v44 }
  0x59   :  { %v235_v12 = vxor.u32 2147483648, %v234_v11 }
  0x5b   :  { %v236_v16 = vsel %vm153_vm0, %v235_v12, %v234_v11  ;;  %v467_v11 = vld [vmem:[%s2880_s0 + $0x28] sm:$0xff] }
  0x5c   :  { %v239_v17 = vsel %vm152_vm1, %v2329_v4, %v236_v16  ;;  %v2180_v4 = vld [vmem:[%s2883_s3 + $0x38] sm:$0xff]   ;;  %v509_v12 = vld [vmem:[%s2881_s1 + $0x28] sm:$0xff] }
  0x5d   :  { %2218 = vcosq.f32 %v239_v17  ;;  %2057 = vmatpush3.bf16.msra.mxu0 %v2180_v4  ;;  %v511_v16 = vld [vmem:[%s2881_s1 + $0x38] sm:$0xff] }
  0x5e   :  { %2220 = vsinq.f32 %v239_v17  ;;  %2086 = vmatprep.subr.bf16.mxu0 %v2182_v51  ;;  %v473_v17 = vld [vmem:[%s2880_s0 + $0x58] sm:$0xff] }
  0x60   :  { %v2215_v19 = vpop.eup %2214 }
  0x61   :  { %v2217_v20 = vpop.eup %2216  ;;  %v147_v34 = vxor.u32 2147483648, %v2215_v19 }
  0x62   :  { %v144_v22 = vxor.u32 2147483648, %v2217_v20 }
  0x63   :  { %v355_v10 = vsel %vm353_vm2, %v147_v34, %v2217_v20  ;;  %v148_v24 = vsel %vm146_vm3, %v147_v34, %v2217_v20 }
  0x64   :  { %v352_v26 = vsel %vm350_vm4, %v2215_v19, %v144_v22  ;;  %v145_v27 = vsel %vm143_vm5, %v2215_v19, %v144_v22  ;;  %v470_v19 = vld [vmem:[%s2880_s0 + $0x40] sm:$0xff]  ;;  %v472_v22 = vld [vmem:[%s2880_s0 + $0x50] sm:$0xff] }
  0x65   :  { %v356_v28 = vsel %vm349_vm6, %v352_v26, %v355_v10  ;;  %v149_v29 = vsel %vm142_vm7, %v145_v27, %v148_v24  ;;  %v514_v10 = vld [vmem:[%s2881_s1 + $0x50] sm:$0xff] }
  0x66   :  { %v357_v25 = vsel %vm140_vm8, nan, %v356_v28  ;;  %v150_v33 = vsel %vm140_vm8, nan, %v149_v29 }
  0x67   :  { %522 = vperm.xlu1 %2149, %v357_v25   ;;  %480 = vperm.xlu0 %2148, %v150_v33   ;;  %v2219_v40 = vpop.eup %2218  ;;  %v517_v25 = vld [vmem:[%s2881_s1 + $0x68] sm:$0xff] }
  0x68   :  { %v2221_v42 = vpop.eup %2220  ;;  %v250_v43 = vxor.u32 2147483648, %v2219_v40 }
  0x69   :  { %v247_v45 = vxor.u32 2147483648, %v2221_v42 }
  0x6a   :  { %v459_v23 = vsel %vm457_vm9, %v250_v43, %v2221_v42  ;;  %v251_v47 = vsel %vm249_vm10, %v250_v43, %v2221_v42  ;;  %v477_v42 = vld [vmem:[%s2880_s0 + $0x78] sm:$0xff] }
  0x6b   :  { %v456_v48 = vsel %vm454_vm11, %v2219_v40, %v247_v45  ;;  %v248_v49 = vsel %vm246_vm12, %v2219_v40, %v247_v45  ;;  %v519_v43 = vld [vmem:[%s2881_s1 + $0x78] sm:$0xff] }
  0x6c   :  { %v460_v41 = vsel %vm453_vm13, %v456_v48, %v459_v23  ;;  %v252_v36 = vsel %vm245_vm14, %v248_v49, %v251_v47 }
  0x6d   :  { %v461_v37 = vsel %vm243_vm15, nan, %v460_v41  ;;  %v253_v50 = vsel %vm243_vm15, nan, %v252_v36 }
  0x6e   :  { %527 = vperm.xlu1 %2149, %v461_v37   ;;  %485 = vperm.xlu0 %2148, %v253_v50  }
  0x72   :  { %706 = vperm.xlu1 %2149, %v2323_v2   ;;  %701 = vperm.xlu0 %2148, %v2318_v1   ;;  %v505_v2 = vld [vmem:[%s2881_s1 + $0x8] sm:$0xff] }
  0xe6   :  { %v2574_v53 = vpop.permute.xlu1 %522  ;;  %v2576_v1 = vpop.permute.xlu0 %480 }
  0xe7   :  { %v489_v60 = vmul.f32 %v2576_v1, %v463_v6  ;;  %v531_v61 = vmul.f32 %v2574_v53, %v505_v2  ;;  %v491_v62 = vmul.f32 %v2576_v1, %v465_v54  ;;  %v533_v63 = vmul.f32 %v2574_v53, %v507_v55  ;;  %v2185_v6 = vld [vmem:[%s2883_s3 + $0x180] sm:$0xff]  }
  0xe8   :  { %v488_v5 = vmul.f32 %v2576_v1, %v462_v56  ;;  %v530_v7 = vmul.f32 %v2574_v53, %v504_v57  ;;  %v490_v8 = vmul.f32 %v2576_v1, %v464_v58  ;;  %v532_v9 = vmul.f32 %v2574_v53, %v506_v59  ;;  %v2186_v59 = vld [vmem:[%s2883_s3 + $0x148] sm:$0xff]  }
  0xe9   :  { %v547_v20 = vadd.f32 %v531_v61, %v489_v60  ;;  %v549_v34 = vadd.f32 %v533_v63, %v491_v62  ;;  %v493_v24 = vmul.f32 %v2576_v1, %v467_v11  ;;  %v535_v26 = vmul.f32 %v2574_v53, %v509_v12  ;;  %v2187_v60 = vld [vmem:[%s2883_s3 + $0x1c8] sm:$0xff]   ;;  %v2193_v11 = vld [vmem:[%s2883_s3 + $0x190] sm:$0xff]   ;;  %v2194_v12 = vld [vmem:[%s2883_s3 + $0x158] sm:$0xff]  }
  0xea   :  { %v546_v29 = vadd.f32 %v530_v7, %v488_v5  ;;  %v548_v31 = vadd.f32 %v532_v9, %v490_v8  ;;  %v495_v33 = vmul.f32 %v2576_v1, %v469_v13  ;;  %v537_v38 = vmul.f32 %v2574_v53, %v511_v16  ;;  %v2188_v63 = vld [vmem:[%s2883_s3 + $0x108] sm:$0xff]   ;;  %v2190_v7 = vld [vmem:[%s2883_s3 + $0x150] sm:$0xff]   ;;  %v2195_v13 = vld [vmem:[%s2883_s3 + $0x1d8] sm:$0xff]  }
  0xeb   :  { %v551_v2 = vadd.f32 %v535_v26, %v493_v24  ;;  %v2189_v5 = vld [vmem:[%s2883_s3 + $0x188] sm:$0xff]   ;;  %v2191_v8 = vld [vmem:[%s2883_s3 + $0x1d0] sm:$0xff]   ;;  %v2198_v16 = vld [vmem:[%s2883_s3 + $0x160] sm:$0xff]  }
  0xec   :  { %v553_v54 = vadd.f32 %v537_v38, %v495_v33  ;;  %v2192_v9 = vld [vmem:[%s2883_s3 + $0x110] sm:$0xff]   ;;  %v474_v26 = vld [vmem:[%s2880_s0 + $0x60] sm:$0xff] }
  0xed   :  { %v2642_v27 = vpop.permute.xlu1 %527  ;;  %v2644_v28 = vpop.permute.xlu0 %485  ;;  %v2207_v24 = vld [vmem:[%s2883_s3 + $0x1f0] sm:$0xff]   ;;  %v508_v33 = vld [vmem:[%s2881_s1 + $0x20] sm:$0xff] }
  0xee   :  { %v497_v30 = vmul.f32 %v2644_v28, %v471_v14  ;;  %v539_v3 = vmul.f32 %v2642_v27, %v513_v15  ;;  %v499_v39 = vmul.f32 %v2644_v28, %v473_v17  ;;  %v541_v40 = vmul.f32 %v2642_v27, %v515_v18  ;;  %v2196_v14 = vld [vmem:[%s2883_s3 + $0x118] sm:$0xff]   ;;  %v2199_v17 = vld [vmem:[%s2883_s3 + $0x1e0] sm:$0xff]   ;;  %v468_v38 = vld [vmem:[%s2880_s0 + $0x30] sm:$0xff] }
  0xef   :  { %v496_v45 = vmul.f32 %v2644_v28, %v470_v19  ;;  %v538_v23 = vmul.f32 %v2642_v27, %v512_v21  ;;  %v498_v47 = vmul.f32 %v2644_v28, %v472_v22  ;;  %v540_v48 = vmul.f32 %v2642_v27, %v514_v10  ;;  %v2197_v15 = vld [vmem:[%s2883_s3 + $0x198] sm:$0xff]   ;;  %v2200_v18 = vld [vmem:[%s2883_s3 + $0x120] sm:$0xff]   ;;  %v2204_v21 = vld [vmem:[%s2883_s3 + $0x128] sm:$0xff]  }
  0xf0   :  { %v555_v49 = vadd.f32 %v539_v3, %v497_v30  ;;  %v557_v41 = vadd.f32 %v541_v40, %v499_v39  ;;  %v501_v36 = vmul.f32 %v2644_v28, %v475_v32  ;;  %v543_v37 = vmul.f32 %v2642_v27, %v517_v25  ;;  %v2201_v19 = vld [vmem:[%s2883_s3 + $0x1a0] sm:$0xff]   ;;  %v2205_v22 = vld [vmem:[%s2883_s3 + $0x1a8] sm:$0xff]   ;;  %v2206_v10 = vld [vmem:[%s2883_s3 + $0x170] sm:$0xff]  }
  0xf1   :  { %v554_v50 = vadd.f32 %v538_v23, %v496_v45  ;;  %v556_v44 = vadd.f32 %v540_v48, %v498_v47  ;;  %v503_v35 = vmul.f32 %v2644_v28, %v477_v42  ;;  %v545_v4 = vmul.f32 %v2642_v27, %v519_v43  ;;  %v518_v32 = vld [vmem:[%s2881_s1 + $0x70] sm:$0xff]  ;;  %v466_v25 = vld [vmem:[%s2880_s0 + $0x20] sm:$0xff]  ;;  %v2210_v42 = vld [vmem:[%s2883_s3 + $0x178] sm:$0xff]  }
  0xf2   :  { %v563_v46 = vpack.c.bf16 %v555_v49, %v547_v20  ;;  %v565_v51 = vpack.c.bf16 %v557_v41, %v549_v34  ;;  %v559_v57 = vadd.f32 %v543_v37, %v501_v36  ;;  %v2202_v20 = vld [vmem:[%s2883_s3 + $0x168] sm:$0xff]   ;;  %v2208_v30 = vld [vmem:[%s2883_s3 + $0x130] sm:$0xff]   ;;  %v500_v39 = vmul.f32 %v2644_v28, %v474_v26  ;;  %v2211_v43 = vld [vmem:[%s2883_s3 + $0x1f8] sm:$0xff]  }
  0xf3   :  { %v562_v55 = vpack.c.bf16 %v554_v50, %v546_v29  ;;  %v564_v56 = vpack.c.bf16 %v556_v44, %v548_v31  ;;  %v561_v58 = vadd.f32 %v545_v4, %v503_v35  ;;  %v2203_v34 = vld [vmem:[%s2883_s3 + $0x1e8] sm:$0xff]   ;;  %v516_v29 = vld [vmem:[%s2881_s1 + $0x60] sm:$0xff]  ;;  %v476_v31 = vld [vmem:[%s2880_s0 + $0x70] sm:$0xff]  ;;  %v544_v47 = vmul.f32 %v2642_v27, %v518_v32 }
  0xf4   :  { %1133 = vmatprep.mubr.bf16.mxu0 %v563_v46  ;;  %1174 = vmatprep.mubr.bf16.mxu1 %v565_v51  ;;  %v567_v61 = vpack.c.bf16 %v559_v57, %v551_v2  ;;  %v2209_v3 = vld [vmem:[%s2883_s3 + $0x1b0] sm:$0xff]   ;;  %v542_v45 = vmul.f32 %v2642_v27, %v516_v29  ;;  %v502_v23 = vmul.f32 %v2644_v28, %v476_v31  ;;  %v2212_v37 = vld [vmem:[%s2883_s3 + $0x138] sm:$0xff]   ;;  %v1277_v4 = vld [vmem:[#allocation2] sm:$0xff] }
  0xf5   :  { %1134 = vmatmul.mubr.bf16.vlgmr.msra.gmra.mrb[0].mxu0 %v562_v55  ;;  %1175 = vmatmul.mubr.bf16.vlgmr.msra.gmra.mrb[0].mxu1 %v564_v56  ;;  %v569_v62 = vpack.c.bf16 %v561_v58, %v553_v54  ;;  %v510_v40 = vld [vmem:[%s2881_s1 + $0x30] sm:$0xff]  ;;  %v492_v48 = vmul.f32 %v2576_v1, %v466_v25  ;;  %v534_v49 = vmul.f32 %v2574_v53, %v508_v33  ;;  %v2213_v28 = vld [vmem:[%s2883_s3 + $0x1b8] sm:$0xff]   ;;  %v1281_v46 = vld [vmem:[#allocation2 + $0x20] sm:$0xff] }
  0xf6   :  { %2087 = vmatpush3.bf16.msra.mxu0 %v2184_v52  ;;  %2109 = vmatpush3.bf16.msra.mxu1 %v2185_v6  ;;  %v494_v41 = vmul.f32 %v2576_v1, %v468_v38  ;;  %v536_v36 = vmul.f32 %v2574_v53, %v510_v40  ;;  %v558_v27 = vadd.f32 %v542_v45, %v500_v39  ;;  %v1278_v51 = vld [vmem:[#allocation2 + $0x8] sm:$0xff]  ;;  %v1285_v54 = vld [vmem:[#allocation2 + $0x40] sm:$0xff] }
  0xf7   :  { %1215 = vmatprep.mubr.bf16.mxu0 %v567_v61  ;;  %1256 = vmatprep.mubr.bf16.mxu1 %v569_v62  ;;  %v560_v50 = vadd.f32 %v544_v47, %v502_v23  ;;  %v550_v44 = vadd.f32 %v534_v49, %v492_v48  ;;  %v1978_v52 = vcombine.low %v1277_v4, %v1281_v46  ;;  %v1282_v2 = vld [vmem:[#allocation2 + $0x28] sm:$0xff]  ;;  %v1289_v55 = vld [vmem:[#allocation2 + $0x60] sm:$0xff] }
  0xf8   :  { %2088 = vmatprep.subr.bf16.mxu0 %v2186_v59  ;;  %2110 = vmatprep.subr.bf16.mxu1 %v2187_v60  ;;  %v552_v35 = vadd.f32 %v536_v36, %v494_v41  ;;  %v1979_v6 = vcombine.high %v1277_v4, %v1281_v46  ;;  %v1980_v56 = vcombine.low %v1278_v51, %v1282_v2  ;;  %v1286_v59 = vld [vmem:[#allocation2 + $0x48] sm:$0xff]  ;;  %v1293_v61 = vld [vmem:[#allocation2 + $0x80] sm:$0xff]  ;;  %v2798_v4 = vld [vmem:[#allocation2 + $0x30] sm:$0xff] }
  0xf9   :  { %v566_v1 = vpack.c.bf16 %v558_v27, %v550_v44  ;;  %v1981_v57 = vcombine.high %v1278_v51, %v1282_v2  ;;  %v1987_v58 = vcombine.high %v1285_v54, %v1289_v55  ;;  %v1290_v60 = vld [vmem:[#allocation2 + $0x68] sm:$0xff]  ;;  %v1317_v33 = vld [vmem:[#allocation2 + $0x140] sm:$0xff]  ;;  %v2804_v2 = vld [vmem:[#allocation2 + $0x18] sm:$0xff] }
  0xfa   :  { %2089 = vmatpush3.bf16.msra.mxu0 %v2188_v63  ;;  %2111 = vmatpush3.bf16.msra.mxu1 %v2189_v5  ;;  %v568_v53 = vpack.c.bf16 %v560_v50, %v552_v35  ;;  %v1989_v62 = vcombine.high %v1286_v59, %v1290_v60  ;;  %v1297_v63 = vld [vmem:[#allocation2 + $0xa0] sm:$0xff]  ;;  %v1294_v5 = vld [vmem:[#allocation2 + $0x88] sm:$0xff] }
  0xfb   :  { %2090 = vmatprep.subr.bf16.mxu0 %v2190_v7  ;;  %2112 = vmatprep.subr.bf16.mxu1 %v2191_v8  ;;  %v1298_v7 = vld [vmem:[#allocation2 + $0xa8] sm:$0xff]  ;;  %v1986_v8 = vcombine.low %v1285_v54, %v1289_v55  ;;  %v1321_v38 = vld [vmem:[#allocation2 + $0x160] sm:$0xff]  ;;  %v2806_v54 = vld [vmem:[#allocation2 + $0x38] sm:$0xff] }
  0xfc   :  { %v1322_v39 = vld [vmem:[#allocation2 + $0x168] sm:$0xff]  ;;  %v2018_v40 = vcombine.low %v1317_v33, %v1321_v38  ;;  %v1325_v45 = vld [vmem:[#allocation2 + $0x180] sm:$0xff]  ;;  %v1984_v55 = vcombine.low %v2804_v2, %v2806_v54 }
  0xfd   :  { %v1329_v23 = vld [vmem:[#allocation2 + $0x1a0] sm:$0xff]  ;;  %v1326_v47 = vld [vmem:[#allocation2 + $0x188] sm:$0xff] }
  0xfe   :  { %2091 = vmatpush3.bf16.msra.mxu0 %v2192_v9  ;;  %2113 = vmatpush3.bf16.msra.mxu1 %v2193_v11  ;;  %v1988_v9 = vcombine.low %v1286_v59, %v1290_v60  ;;  %v1995_v11 = vcombine.high %v1293_v61, %v1297_v63  ;;  %v2027_v48 = vcombine.high %v1325_v45, %v1329_v23  ;;  %v1330_v49 = vld [vmem:[#allocation2 + $0x1a8] sm:$0xff]  ;;  %v1337_v27 = vld [vmem:[#allocation2 + $0x1e0] sm:$0xff]  ;;  %v702_v59 = vpop.permute.xlu0 %701 }
  0xff   :  { %2092 = vmatprep.subr.bf16.mxu0 %v2194_v12  ;;  %2114 = vmatprep.subr.bf16.mxu1 %v2195_v13  ;;  %v1997_v12 = vcombine.high %v1294_v5, %v1298_v7  ;;  %v1301_v13 = vld [vmem:[#allocation2 + $0xc0] sm:$0xff]  ;;  %v2026_v41 = vcombine.low %v1325_v45, %v1329_v23  ;;  %v2028_v36 = vcombine.low %v1326_v47, %v1330_v49  ;;  %v1334_v50 = vld [vmem:[#allocation2 + $0x1c8] sm:$0xff]  ;;  %v1287_v23 = vld [vmem:[#allocation2 + $0x50] sm:$0xff] }
 0x102   :  { %2093 = vmatpush3.bf16.msra.mxu0 %v2196_v14  ;;  %2115 = vmatpush3.bf16.msra.mxu1 %v2197_v15  ;;  %v1305_v14 = vld [vmem:[#allocation2 + $0xe0] sm:$0xff]  ;;  %v1302_v15 = vld [vmem:[#allocation2 + $0xc8] sm:$0xff] }
 0x103   :  { %2094 = vmatprep.subr.bf16.mxu0 %v2198_v16  ;;  %2116 = vmatprep.subr.bf16.mxu1 %v2199_v17  ;;  %v1306_v16 = vld [vmem:[#allocation2 + $0xe8] sm:$0xff]  ;;  %v1994_v17 = vcombine.low %v1293_v61, %v1297_v63 }
 0x104   :  { %v2004_v26 = vcombine.low %v1302_v15, %v1306_v16 }
 0x106   :  { %2095 = vmatpush3.bf16.msra.mxu0 %v2200_v18  ;;  %2117 = vmatpush3.bf16.msra.mxu1 %v2201_v19  ;;  %v1996_v18 = vcombine.low %v1294_v5, %v1298_v7  ;;  %v2003_v19 = vcombine.high %v1301_v13, %v1305_v14 }
 0x107   :  { %2096 = vmatprep.subr.bf16.mxu0 %v2202_v20  ;;  %2118 = vmatprep.subr.bf16.mxu1 %v2203_v34  ;;  %v2005_v20 = vcombine.high %v1302_v15, %v1306_v16  ;;  %v1309_v34 = vld [vmem:[#allocation2 + $0x100] sm:$0xff] }
 0x10a   :  { %2097 = vmatpush3.bf16.msra.mxu0 %v2204_v21  ;;  %2119 = vmatpush3.bf16.msra.mxu1 %v2205_v22  ;;  %v1313_v21 = vld [vmem:[#allocation2 + $0x120] sm:$0xff]  ;;  %v1310_v22 = vld [vmem:[#allocation2 + $0x108] sm:$0xff] }
 0x10b   :  { %2098 = vmatprep.subr.bf16.mxu0 %v2206_v10  ;;  %2120 = vmatprep.subr.bf16.mxu1 %v2207_v24  ;;  %v1314_v10 = vld [vmem:[#allocation2 + $0x128] sm:$0xff]  ;;  %v2002_v24 = vcombine.low %v1301_v13, %v1305_v14  ;;  %v2011_v29 = vcombine.high %v1309_v34, %v1313_v21  ;;  %v2010_v32 = vcombine.low %v1309_v34, %v1313_v21 }
 0x10c   :  { %v2013_v31 = vcombine.high %v1310_v22, %v1314_v10  ;;  %v2012_v25 = vcombine.low %v1310_v22, %v1314_v10 }
 0x10e   :  { %2099 = vmatpush3.bf16.msra.mxu0 %v2208_v30  ;;  %2121 = vmatpush3.bf16.msra.mxu1 %v2209_v3  ;;  %v2019_v30 = vcombine.high %v1317_v33, %v1321_v38  ;;  %v1318_v3 = vld [vmem:[#allocation2 + $0x148] sm:$0xff] }
 0x10f   :  { %2100 = vmatprep.subr.bf16.mxu0 %v2210_v42  ;;  %2122 = vmatprep.subr.bf16.mxu1 %v2211_v43  ;;  %v2020_v42 = vcombine.low %v1318_v3, %v1322_v39  ;;  %v2021_v43 = vcombine.high %v1318_v3, %v1322_v39  ;;  %v1977_v3 = vld [vmem:[%s2885_s5] ss:$0 sm:$0xff] }
 0x112   :  { %2101 = vmatpush3.bf16.msra.mxu0 %v2212_v37  ;;  %2123 = vmatpush3.bf16.msra.mxu1 %v2213_v28  ;;  %v2029_v37 = vcombine.high %v1326_v47, %v1330_v49  ;;  %v1333_v28 = vld [vmem:[#allocation2 + $0x1c0] sm:$0xff]  ;;  %v1291_v47 = vld [vmem:[#allocation2 + $0x70] sm:$0xff]  ;;  %v1292_v49 = vld [vmem:[#allocation2 + $0x78] sm:$0xff] }
 0x113   :  { %1703 = vmatprep.subr.bf16.mxu0 %v1979_v6  ;;  %1746 = vmatprep.subr.bf16.mxu1 %v1981_v57  ;;  %v2034_v44 = vcombine.low %v1333_v28, %v1337_v27  ;;  %v2035_v35 = vcombine.high %v1333_v28, %v1337_v27  ;;  %v1912_v57 = vld [vmem:[%s2884_s4] ss:$0 sm:$0xff]  ;;  %v1991_v28 = vcombine.high %v1287_v23, %v1291_v47 }
 0x114   :  { %v715_v5 = vmul.f32 %v1912_v57, %v702_v59 }
 0x115   :  { %1216 = vmatmul.mubr.bf16.vlgmr.msra.gmra.mrb[4].mxu0 %v566_v1  ;;  %1257 = vmatmul.mubr.bf16.vlgmr.msra.gmra.mrb[4].mxu1 %v568_v53  ;;  %v1338_v1 = vld [vmem:[#allocation2 + $0x1e8] sm:$0xff]  ;;  %v2796_v53 = vld [vmem:[#allocation2 + $0x10] sm:$0xff] }
 0x116   :  { %1735 = vmatprep.mubr.bf16.mxu0 %v2249_v0  ;;  %1778 = vmatprep.mubr.bf16.mxu1 %v2249_v0  ;;  %v2036_v46 = vcombine.low %v1334_v50, %v1338_v1  ;;  %v2037_v51 = vcombine.high %v1334_v50, %v1338_v1  ;;  %v1983_v6 = vcombine.high %v2796_v53, %v2798_v4  ;;  %v1295_v50 = vld [vmem:[#allocation2 + $0x90] sm:$0xff]  ;;  %v1300_v1 = vld [vmem:[#allocation2 + $0xb8] sm:$0xff] }
 0x117   :  { %1704 = vmatpush1.bf16.msra.mxu0 %v1978_v52  ;;  %1747 = vmatpush1.bf16.msra.mxu1 %v1980_v56  ;;  %v1982_v52 = vcombine.low %v2796_v53, %v2798_v4  ;;  %v1985_v56 = vcombine.high %v2804_v2, %v2806_v54  ;;  %v1303_v54 = vld [vmem:[#allocation2 + $0xd0] sm:$0xff] }
 0x118   :  { %1705 = vmatprep.subr.bf16.mxu0 %v1987_v58  ;;  %1748 = vmatprep.subr.bf16.mxu1 %v1989_v62  ;;  %v707_v58 = vpop.permute.xlu1 %706 }
 0x119   :  { %v716_v14 = vmul.f32 %v1912_v57, %v707_v58  ;;  %v1304_v57 = vld [vmem:[#allocation2 + $0xd8] sm:$0xff] }
 0x11a   :  { %v1308_v58 = vld [vmem:[#allocation2 + $0xf8] sm:$0xff] }
 0x11b   :  { %1706 = vmatpush1.bf16.msra.mxu0 %v1986_v8  ;;  %1749 = vmatpush1.bf16.msra.mxu1 %v1988_v9 }
 0x11c   :  { %1707 = vmatprep.subr.bf16.mxu0 %v1995_v11  ;;  %1750 = vmatprep.subr.bf16.mxu1 %v1997_v12 }
 0x11f   :  { %1708 = vmatpush1.bf16.msra.mxu0 %v1994_v17  ;;  %1751 = vmatpush1.bf16.msra.mxu1 %v1996_v18 }
 0x120   :  { %1709 = vmatprep.subr.bf16.mxu0 %v2003_v19  ;;  %1752 = vmatprep.subr.bf16.mxu1 %v2005_v20 }
 0x123   :  { %1710 = vmatpush1.bf16.msra.mxu0 %v2002_v24  ;;  %1753 = vmatpush1.bf16.msra.mxu1 %v2004_v26 }
 0x124   :  { %1711 = vmatprep.subr.bf16.mxu0 %v2011_v29  ;;  %1754 = vmatprep.subr.bf16.mxu1 %v2013_v31 }
 0x127   :  { %1712 = vmatpush1.bf16.msra.mxu0 %v2010_v32  ;;  %1755 = vmatpush1.bf16.msra.mxu1 %v2012_v25 }
 0x128   :  { %1713 = vmatprep.subr.bf16.mxu0 %v2019_v30  ;;  %1756 = vmatprep.subr.bf16.mxu1 %v2021_v43 }
 0x12b   :  { %1714 = vmatpush1.bf16.msra.mxu0 %v2018_v40  ;;  %1757 = vmatpush1.bf16.msra.mxu1 %v2020_v42 }
 0x12c   :  { %1715 = vmatprep.subr.bf16.mxu0 %v2027_v48  ;;  %1758 = vmatprep.subr.bf16.mxu1 %v2029_v37  ;;  %v1288_v48 = vld [vmem:[#allocation2 + $0x58] sm:$0xff] }
 0x12d   :  { %v1993_v27 = vcombine.high %v1288_v48, %v1292_v49 }
 0x12f   :  { %1716 = vmatpush1.bf16.msra.mxu0 %v2026_v41  ;;  %1759 = vmatpush1.bf16.msra.mxu1 %v2028_v36 }
 0x130   :  { %1717 = vmatprep.subr.bf16.mxu0 %v2035_v35  ;;  %1760 = vmatprep.subr.bf16.mxu1 %v2037_v51  ;;  %v1296_v35 = vld [vmem:[#allocation2 + $0x98] sm:$0xff]  ;;  %v1992_v51 = vcombine.low %v1288_v48, %v1292_v49 }
 0x131   :  { %v2001_v2 = vcombine.high %v1296_v35, %v1300_v1  ;;  %v2000_v53 = vcombine.low %v1296_v35, %v1300_v1 }
 0x133   :  { %1718 = vmatpush1.bf16.msra.mxu0 %v2034_v44  ;;  %1761 = vmatpush1.bf16.msra.mxu1 %v2036_v46  ;;  %v1299_v44 = vld [vmem:[#allocation2 + $0xb0] sm:$0xff]  ;;  %v1990_v46 = vcombine.low %v1287_v23, %v1291_v47 }
 0x134   :  { %1789 = vmatprep.subr.bf16.mxu0 %v1983_v6  ;;  %1832 = vmatprep.subr.bf16.mxu1 %v1985_v56  ;;  %v1999_v6 = vcombine.high %v1295_v50, %v1299_v44  ;;  %v1307_v56 = vld [vmem:[#allocation2 + $0xf0] sm:$0xff]  ;;  %v1998_v59 = vcombine.low %v1295_v50, %v1299_v44 }
 0x135   :  { %v2007_v4 = vcombine.high %v1303_v54, %v1307_v56 }
 0x1c8   :  { %v2058_v60 = vpop.f32.mrb[0].mxu0  ;;  %v2080_v61 = vpop.f32.mrb[0].mxu1 }
 0x1c9   :  { %v2059_v62 = vpop.f32.mrb[1].mxu0  ;;  %v2081_v63 = vpop.f32.mrb[1].mxu1 }
 0x1ca   :  { %v2060_v7 = vadd.f32 %v2059_v62, %v2058_v60  ;;  %v2082_v8 = vadd.f32 %v2081_v63, %v2080_v61  ;;  %v2061_v9 = vpop.f32.mrb[2].mxu0  ;;  %v2083_v11 = vpop.f32.mrb[2].mxu1  ;;  %v1315_v60 = vld [vmem:[#allocation2 + $0x130] sm:$0xff]  ;;  %v1312_v61 = vld [vmem:[#allocation2 + $0x118] sm:$0xff]  ;;  %v2006_v63 = vcombine.low %v1303_v54, %v1307_v56 }
 0x1cb   :  { %v2062_v12 = vpop.f32.mrb[3].mxu0  ;;  %v2084_v13 = vpop.f32.mrb[3].mxu1  ;;  %v1316_v62 = vld [vmem:[#allocation2 + $0x138] sm:$0xff] }
 0x1cc   :  { %v1136_v15 = vadd.f32 %v2060_v7, %v715_v5  ;;  %v2063_v16 = vadd.f32 %v2062_v12, %v2061_v9  ;;  %v2085_v17 = vadd.f32 %v2084_v13, %v2083_v11  ;;  %v2008_v5 = vcombine.low %v1304_v57, %v1308_v58  ;;  %v1323_v9 = vld [vmem:[#allocation2 + $0x170] sm:$0xff]  ;;  %v1320_v11 = vld [vmem:[#allocation2 + $0x158] sm:$0xff] }
 0x1cd   :  { %v1324_v12 = vld [vmem:[#allocation2 + $0x178] sm:$0xff] }
 0x1ce   :  { %v1177_v18 = vadd.f32 %v2082_v8, %v1136_v15  ;;  %v1139_v19 = vadd.f32 %v2063_v16, %v716_v14  ;;  %v1319_v8 = vld [vmem:[#allocation2 + $0x150] sm:$0xff]  ;;  %v2016_v14 = vcombine.low %v1312_v61, %v1316_v62  ;;  %v2025_v16 = vcombine.high %v1320_v11, %v1324_v12 }
 0x1cf   :  { %v2023_v15 = vcombine.high %v1319_v8, %v1323_v9 }
 0x1d0   :  { %v1180_v20 = vadd.f32 %v2085_v17, %v1139_v19  ;;  %v1327_v17 = vld [vmem:[#allocation2 + $0x190] sm:$0xff]  ;;  %v1328_v19 = vld [vmem:[#allocation2 + $0x198] sm:$0xff] }
 0x1e8   :  { %v2102_v34 = vpop.f32.mrb[4].mxu0  ;;  %v2124_v21 = vpop.f32.mrb[4].mxu1 }
 0x1e9   :  { %v2103_v22 = vpop.f32.mrb[5].mxu0  ;;  %v2125_v10 = vpop.f32.mrb[5].mxu1 }
 0x1ea   :  { %v2104_v24 = vadd.f32 %v2103_v22, %v2102_v34  ;;  %v2126_v26 = vadd.f32 %v2125_v10, %v2124_v21  ;;  %v2105_v29 = vpop.f32.mrb[6].mxu0  ;;  %v2127_v31 = vpop.f32.mrb[6].mxu1  ;;  %v2022_v34 = vcombine.low %v1319_v8, %v1323_v9  ;;  %v2024_v21 = vcombine.low %v1320_v11, %v1324_v12 }
 0x1eb   :  { %v2106_v32 = vpop.f32.mrb[7].mxu0  ;;  %v2128_v25 = vpop.f32.mrb[7].mxu1 }
 0x1ec   :  { %v1218_v33 = vadd.f32 %v2104_v24, %v1177_v18  ;;  %v2107_v38 = vadd.f32 %v2106_v32, %v2105_v29  ;;  %v2129_v30 = vadd.f32 %v2128_v25, %v2127_v31  ;;  %v1331_v18 = vld [vmem:[#allocation2 + $0x1b0] sm:$0xff]  ;;  %v1336_v29 = vld [vmem:[#allocation2 + $0x1d8] sm:$0xff] }
 0x1ed   :  { %v2031_v22 = vcombine.high %v1327_v17, %v1331_v18  ;;  %v1335_v24 = vld [vmem:[#allocation2 + $0x1d0] sm:$0xff]  ;;  %v1340_v31 = vld [vmem:[#allocation2 + $0x1f8] sm:$0xff]  ;;  %v2030_v32 = vcombine.low %v1327_v17, %v1331_v18 }
 0x1ee   :  { %v1259_v39 = vadd.f32 %v2126_v26, %v1218_v33  ;;  %v1221_v40 = vadd.f32 %v2107_v38, %v1180_v20  ;;  %v1332_v20 = vld [vmem:[#allocation2 + $0x1b8] sm:$0xff]  ;;  %v1339_v26 = vld [vmem:[#allocation2 + $0x1f0] sm:$0xff]  ;;  %v2041_v38 = vcombine.high %v1336_v29, %v1340_v31 }
 0x1ef   :  { %v2033_v10 = vcombine.high %v1328_v19, %v1332_v20  ;;  %v2032_v25 = vcombine.low %v1328_v19, %v1332_v20  ;;  %v2039_v33 = vcombine.high %v1335_v24, %v1339_v26 }
 0x1f0   :  { %v1272_v42 = vadd.f32 %v1977_v3, %v1259_v39  ;;  %v1262_v43 = vadd.f32 %v2129_v30, %v1221_v40  ;;  %v2038_v30 = vcombine.low %v1335_v24, %v1339_v26  ;;  %v1343_v39 = vlaneseq }
 0x1f2   :  { %v1273_v45 = vadd.f32 %v1977_v3, %v1262_v43  ;;  %v1274_v41 = vmax.f32 %v1272_v42, 0.0  ;;  %v2040_v3 = vcombine.low %v1336_v29, %v1340_v31  ;;  %v1344_v40 = vshrl.u32 %v1343_v39, 7 }
 0x1f4   :  { %v1275_v36 = vmax.f32 %v1273_v45, 0.0  ;;  %v1345_v42 = vsub.s32 0, %v1344_v40  ;;  %v1353_v43 = vsub.s32 2, %v1344_v40  ;;  %v1341_v45 = vld [vmem:[%s2887_s7] sm:$0xff]  ;;  %v1349_v23 = vsub.s32 1, %v1344_v40 }
 0x1f5   :  { %v1357_v47 = vsub.s32 3, %v1344_v40 }
 0x1f6   :  { %v2818_v37 = vpack.c.bf16 %v1275_v36, %v1274_v41  ;;  %v1346_v48 = vrot.slane %v1341_v45, %v1345_v42  ;;  %v1354_v49 = vrot.slane %v1341_v45, %v1353_v43  ;;  %v1350_v41 = vrot.slane %v1341_v45, %v1349_v23 }
 0x1f7   :  { %v1358_v36 = vrot.slane %v1341_v45, %v1357_v47 }
 0x1f8   :  { %1736 = vmatmul.mubr.bf16.vlgmr.msra.gmra.mrb[8].mxu0 %v2818_v37  ;;  %1779 = vmatmul.mubr.bf16.vlgmr.msra.gmra.mrb[8].mxu1 %v2818_v37 }
 0x1f9   :  { %1790 = vmatpush1.bf16.msra.mxu0 %v1982_v52  ;;  %1833 = vmatpush1.bf16.msra.mxu1 %v1984_v55  ;;  %v2009_v52 = vcombine.high %v1304_v57, %v1308_v58  ;;  %v1311_v55 = vld [vmem:[#allocation2 + $0x110] sm:$0xff] }
 0x1fa   :  { %1791 = vmatprep.subr.bf16.mxu0 %v1991_v28  ;;  %1834 = vmatprep.subr.bf16.mxu1 %v1993_v27  ;;  %v2015_v7 = vcombine.high %v1311_v55, %v1315_v60  ;;  %v2014_v13 = vcombine.low %v1311_v55, %v1315_v60  ;;  %v1373_v55 = vsub.s32 7, %v1344_v40 }
 0x1fb   :  { %1821 = vmatprep.mubr.bf16.mxu0 %v2249_v0  ;;  %1864 = vmatprep.mubr.bf16.mxu1 %v2249_v0  ;;  %v2017_v0 = vcombine.high %v1312_v61, %v1316_v62 }
 0x1fd   :  { %1792 = vmatpush1.bf16.msra.mxu0 %v1990_v46  ;;  %1835 = vmatpush1.bf16.msra.mxu1 %v1992_v51 }
 0x1fe   :  { %1793 = vmatprep.subr.bf16.mxu0 %v1999_v6  ;;  %1836 = vmatprep.subr.bf16.mxu1 %v2001_v2 }
 0x201   :  { %1794 = vmatpush1.bf16.msra.mxu0 %v1998_v59  ;;  %1837 = vmatpush1.bf16.msra.mxu1 %v2000_v53  ;;  %v1361_v53 = vsub.s32 4, %v1344_v40 }
 0x202   :  { %1795 = vmatprep.subr.bf16.mxu0 %v2007_v4  ;;  %1838 = vmatprep.subr.bf16.mxu1 %v2009_v52  ;;  %v1369_v4 = vsub.s32 6, %v1344_v40  ;;  %v1365_v52 = vsub.s32 5, %v1344_v40 }
 0x203   :  { %v1362_v60 = vrot.slane %v1341_v45, %v1361_v53 }
 0x204   :  { %v1370_v61 = vrot.slane %v1341_v45, %v1369_v4  ;;  %v1366_v62 = vrot.slane %v1341_v45, %v1365_v52 }
 0x205   :  { %1796 = vmatpush1.bf16.msra.mxu0 %v2006_v63  ;;  %1839 = vmatpush1.bf16.msra.mxu1 %v2008_v5  ;;  %v1374_v63 = vrot.slane %v1341_v45, %v1373_v55 }
 0x206   :  { %1797 = vmatprep.subr.bf16.mxu0 %v2015_v7  ;;  %1840 = vmatprep.subr.bf16.mxu1 %v2017_v0 }
 0x209   :  { %1798 = vmatpush1.bf16.msra.mxu0 %v2014_v13  ;;  %1841 = vmatpush1.bf16.msra.mxu1 %v2016_v14 }
 0x20a   :  { %1799 = vmatprep.subr.bf16.mxu0 %v2023_v15  ;;  %1842 = vmatprep.subr.bf16.mxu1 %v2025_v16 }
 0x20d   :  { %1800 = vmatpush1.bf16.msra.mxu0 %v2022_v34  ;;  %1843 = vmatpush1.bf16.msra.mxu1 %v2024_v21 }
 0x20e   :  { %1801 = vmatprep.subr.bf16.mxu0 %v2031_v22  ;;  %1844 = vmatprep.subr.bf16.mxu1 %v2033_v10 }
 0x211   :  { %1802 = vmatpush1.bf16.msra.mxu0 %v2030_v32  ;;  %1845 = vmatpush1.bf16.msra.mxu1 %v2032_v25 }
 0x212   :  { %1803 = vmatprep.subr.bf16.mxu0 %v2039_v33  ;;  %1846 = vmatprep.subr.bf16.mxu1 %v2041_v38 }
 0x215   :  { %1804 = vmatpush1.bf16.msra.mxu0 %v2038_v30  ;;  %1847 = vmatpush1.bf16.msra.mxu1 %v2040_v3 }
 0x218   :  { %1822 = vmatmul.mubr.bf16.vlgmr.msra.gmra.mrb[12].mxu0 %v2818_v37  ;;  %1865 = vmatmul.mubr.bf16.vlgmr.msra.gmra.mrb[12].mxu1 %v2818_v37 }
 0x2cb   :  { %v1737_v28 = vpop.f32.mrb[8].mxu0  ;;  %v1780_v27 = vpop.f32.mrb[8].mxu1 }
 0x2cc   :  { %v1738_v50 = vadd.f32 %v1737_v28, %v1346_v48  ;;  %v1781_v44 = vadd.f32 %v1780_v27, %v1354_v49  ;;  %v1739_v35 = vpop.f32.mrb[9].mxu0  ;;  %v1782_v37 = vpop.f32.mrb[9].mxu1 }
 0x2cd   :  { %v1740_v1 = vadd.f32 %v1739_v35, %v1350_v41  ;;  %v1783_v46 = vadd.f32 %v1782_v37, %v1358_v36  ;;  %v1741_v51 = vpop.f32.mrb[10].mxu0  ;;  %v1784_v6 = vpop.f32.mrb[10].mxu1 }
 0x2ce   :  { %1875 = vst [vmem:[%s2888_s8] sm:$0xff] %v1738_v50  ;;  %1877 = vst [vmem:[%s2888_s8 + $0x10] sm:$0xff] %v1781_v44  ;;  %v1742_v2 = vadd.f32 %v1741_v51, %v1346_v48  ;;  %v1785_v54 = vadd.f32 %v1784_v6, %v1354_v49  ;;  %v1743_v56 = vpop.f32.mrb[11].mxu0  ;;  %v1786_v57 = vpop.f32.mrb[11].mxu1 }
 0x2cf   :  { %1876 = vst [vmem:[%s2888_s8 + $0x8] sm:$0xff] %v1740_v1  ;;  %1878 = vst [vmem:[%s2888_s8 + $0x18] sm:$0xff] %v1783_v46  ;;  %v1744_v58 = vadd.f32 %v1743_v56, %v1350_v41  ;;  %v1787_v59 = vadd.f32 %v1786_v57, %v1358_v36 }
 0x2d0   :  { %1883 = vst [vmem:[%s2888_s8 + $0x40] sm:$0xff] %v1742_v2  ;;  %1885 = vst [vmem:[%s2888_s8 + $0x50] sm:$0xff] %v1785_v54 }
 0x2d1   :  { %1884 = vst [vmem:[%s2888_s8 + $0x48] sm:$0xff] %v1744_v58  ;;  %1886 = vst [vmem:[%s2888_s8 + $0x58] sm:$0xff] %v1787_v59 }
 0x2eb   :  { %v1823_v5 = vpop.f32.mrb[12].mxu0  ;;  %v1866_v7 = vpop.f32.mrb[12].mxu1 }
 0x2ec   :  { %v1824_v0 = vadd.f32 %v1823_v5, %v1362_v60  ;;  %v1867_v8 = vadd.f32 %v1866_v7, %v1370_v61  ;;  %v1825_v9 = vpop.f32.mrb[13].mxu0  ;;  %v1868_v11 = vpop.f32.mrb[13].mxu1 }
 0x2ed   :  { %v1826_v12 = vadd.f32 %v1825_v9, %v1366_v62  ;;  %v1869_v13 = vadd.f32 %v1868_v11, %v1374_v63  ;;  %v1827_v14 = vpop.f32.mrb[14].mxu0  ;;  %v1870_v15 = vpop.f32.mrb[14].mxu1 }
 0x2ee   :  { %1879 = vst [vmem:[%s2888_s8 + $0x20] sm:$0xff] %v1824_v0  ;;  %1881 = vst [vmem:[%s2888_s8 + $0x30] sm:$0xff] %v1867_v8  ;;  %v1828_v16 = vadd.f32 %v1827_v14, %v1362_v60  ;;  %v1871_v17 = vadd.f32 %v1870_v15, %v1370_v61  ;;  %v1829_v18 = vpop.f32.mrb[15].mxu0  ;;  %v1872_v19 = vpop.f32.mrb[15].mxu1 }
 0x2ef   :  { %1880 = vst [vmem:[%s2888_s8 + $0x28] sm:$0xff] %v1826_v12  ;;  %1882 = vst [vmem:[%s2888_s8 + $0x38] sm:$0xff] %v1869_v13  ;;  %v1830_v20 = vadd.f32 %v1829_v18, %v1366_v62  ;;  %v1873_v34 = vadd.f32 %v1872_v19, %v1374_v63 }
 0x2f0   :  { %1887 = vst [vmem:[%s2888_s8 + $0x60] sm:$0xff] %v1828_v16  ;;  %1889 = vst [vmem:[%s2888_s8 + $0x70] sm:$0xff] %v1871_v17 }
 0x2f1   :  { %1888 = vst [vmem:[%s2888_s8 + $0x68] sm:$0xff] %v1830_v20  ;;  %1890 = vst [vmem:[%s2888_s8 + $0x78] sm:$0xff] %v1873_v34 }
 0x2f2   :  { %1895 = vsyncpa [#allocation3], 1 }

</bundles_post_ra>
